<compile_context>
chip_gen: v7x
topology: tpu7x:2x2x1
jax: 0.10.0
libtpu: 0.0.40
codegen_flags: <defaults>
</compile_context>

<pallas_src>
import functools

import jax
import jax.numpy as jnp
from jax.experimental import pallas as pl
from jax.experimental.pallas import tpu as pltpu

ALPHA = 6.9077542789816375

# Fixed lane width (multiple of 128). Each block spans the full lane extent, so
# the per-block HBM region is contiguous and stores lower to full-width vst.
_LANES = 512

# dtype itemsize -> minimum sublane tile (second-to-last block-dim granularity)
_SUBLANE_MIN = {4: 8, 2: 16, 1: 32}


@functools.lru_cache(maxsize=1)
def _chip_config():
    """Generation-aware tiling/compute config. Defaults are v5e-safe."""
    kind = ""
    try:
        kind = jax.devices()[0].device_kind.lower()
    except Exception:
        pass
    cfg = {
        # in + out, each double-buffered => ~4x block bytes resident.
        "block_target_bytes": 2 << 20,   # ~8 MiB resident, fits v5e's 16 MiB default
        "vmem_limit_bytes": None,
        "two_tensorcores": False,        # split grid across TCs only on v7x
        "bf16_compute": False,           # v5e has no bf16 VALU/EUP
    }
    if "v7" in kind or "7x" in kind:
        cfg.update(
            block_target_bytes=8 << 20,   # ~32 MiB resident at 3.2 TB/s HBM
            vmem_limit_bytes=48 << 20,    # under 64 MiB physical VMEM
            two_tensorcores=True,
            bf16_compute=True,
        )
    elif "v6" in kind:
        cfg.update(
            block_target_bytes=4 << 20,   # ~16 MiB resident, fits 32 MiB default
            bf16_compute=True,
        )
    return cfg


def _translated_sigmoid_kernel(params_ref, x_ref, o_ref, *, compute_dtype, approx):
    # SMEM scalars: params[0] = beta*ALPHA (shift), params[1] = 1/beta.
    shift = params_ref[0].astype(compute_dtype)
    inv_beta = params_ref[1].astype(compute_dtype)

    x = x_ref[...].astype(compute_dtype)
    z = (x - shift) * inv_beta
    e = jnp.exp(-z)                                   # EUP slot
    # Reciprocal on the EUP in f32 (robust lowering); approx only when the
    # output dtype (<=16 bit) cannot resolve the approximation error anyway.
    y = pl.reciprocal((1.0 + e).astype(jnp.float32), approx=approx)
    o_ref[...] = y.astype(o_ref.dtype)


def _round_up(n: int, m: int) -> int:
    return ((n + m - 1) // m) * m


def translated_sigmoid(x: jnp.ndarray, beta) -> jnp.ndarray:
    """Elementwise y = sigmoid((x - beta*ALPHA)/beta) via a Pallas TPU kernel."""
    orig_shape = x.shape
    orig_dtype = x.dtype
    total = int(x.size)
    itemsize = jnp.dtype(orig_dtype).itemsize
    sublane_min = _SUBLANE_MIN.get(itemsize, 8)
    cfg = _chip_config()

    # Scalar params as data (SMEM): works with traced beta, no recompile per value.
    # Note: multiplying by a precomputed 1/beta differs from a true divide by ~1 ulp.
    beta_f = jnp.asarray(beta, jnp.float32)
    params = jnp.stack([beta_f * ALPHA, 1.0 / beta_f])

    compute_dtype = (
        orig_dtype
        if (cfg["bf16_compute"] and orig_dtype == jnp.bfloat16)
        else jnp.float32
    )
    approx = itemsize < 4

    kernel = functools.partial(
        _translated_sigmoid_kernel, compute_dtype=compute_dtype, approx=approx
    )

    # Lane-dense 2-D slab: flatten, pad the tail to a multiple of _LANES
    # (padded zeros pass harmlessly through the sigmoid and are sliced off).
    x_flat = jnp.ravel(x)
    padded_total = _round_up(max(total, 1), _LANES)
    if padded_total != total:
        x_flat = jnp.pad(x_flat, (0, padded_total - total))
    rows = padded_total // _LANES
    x2d = x_flat.reshape(rows, _LANES)

    # Row-block size: dtype-aware multiple of the sublane tile, generation-aware
    # byte target so per-step pipeline overhead stays small without overshooting
    # the scoped-VMEM budget.
    tm = max(
        sublane_min,
        (cfg["block_target_bytes"] // (_LANES * itemsize))
        // sublane_min
        * sublane_min,
    )
    if cfg["two_tensorcores"] and rows > sublane_min:
        # Keep >= 2 (evenly split) grid steps so both v7x TensorCores get work.
        tm = min(tm, _round_up(-(-rows // 2), sublane_min))
    if tm >= rows:
        tm = rows  # single full-extent block (full array dims are always legal)
    grid = (pl.cdiv(rows, tm),)

    compiler_kwargs = {"dimension_semantics": ("parallel",)}
    if cfg["vmem_limit_bytes"] is not None:
        compiler_kwargs["vmem_limit_bytes"] = cfg["vmem_limit_bytes"]

    out2d = pl.pallas_call(
        kernel,
        out_shape=jax.ShapeDtypeStruct((rows, _LANES), orig_dtype),
        grid_spec=pltpu.PrefetchScalarGridSpec(
            num_scalar_prefetch=0,
            grid=grid,
            in_specs=[
                pl.BlockSpec(memory_space=pltpu.MemorySpace.SMEM),  # params (2,)
                pl.BlockSpec((tm, _LANES), lambda i: (i, 0)),
            ],
            out_specs=pl.BlockSpec((tm, _LANES), lambda i: (i, 0)),
        ),
        compiler_params=pltpu.CompilerParams(**compiler_kwargs),
    )(params, x2d)

    out = out2d.reshape(-1)
    if padded_total != total:
        out = out[:total]
    return out.reshape(orig_shape)


def translated_sigmoid_ref(x: jnp.ndarray, beta: float) -> jnp.ndarray:
    return jax.nn.sigmoid((x - beta * ALPHA) / beta)


if __name__ == "__main__":
    key = jax.random.PRNGKey(0)
    k1, k2 = jax.random.split(key)
    beta = 1.5  # the module's constructor argument

    # 1) Module-sized NCHW input (batch=2, channels=4, spatial=16), f32.
    x = jax.random.normal(k1, (2, 4, 16, 16), dtype=jnp.float32)
    y = jax.block_until_ready(translated_sigmoid(x, beta))
    y_ref = translated_sigmoid_ref(x, beta)
    assert y.shape == x.shape and y.dtype == x.dtype
    assert jnp.allclose(y, y_ref, atol=1e-5, rtol=1e-5), "f32 small mismatch"

    # 2) Larger f32 input to exercise the multi-block lane-dense tiled path.
    x_big = jax.random.normal(k2, (8, 16, 64, 64), dtype=jnp.float32)
    y_big = jax.block_until_ready(translated_sigmoid(x_big, beta))
    y_big_ref = translated_sigmoid_ref(x_big, beta)
    assert y_big.shape == x_big.shape and y_big.dtype == x_big.dtype
    assert jnp.allclose(y_big, y_big_ref, atol=1e-5, rtol=1e-5), "f32 big mismatch"

    # 3) bf16 input: dtype-aware tiling + generation-aware compute dtype.
    x_bf16 = x.astype(jnp.bfloat16)
    y_bf16 = jax.block_until_ready(translated_sigmoid(x_bf16, beta))
    y_bf16_ref = translated_sigmoid_ref(x_bf16.astype(jnp.float32), beta)
    assert y_bf16.shape == x_bf16.shape and y_bf16.dtype == jnp.bfloat16
    assert jnp.allclose(
        y_bf16.astype(jnp.float32), y_bf16_ref, atol=1e-2, rtol=1e-2
    ), "bf16 mismatch"

    print("KERNEL_OK")
</pallas_src>

<mosaic_0001>
module attributes {stable_mosaic.version = 11 : i64} {
  func.func @_translated_sigmoid_kernel(%arg0: i32, %arg1: memref<2xf32, #tpu.memory_space<smem>>, %arg2: memref<4x512xf32, #tpu.memory_space<vmem>>, %arg3: memref<4x512xf32, #tpu.memory_space<vmem>>) attributes {dimension_semantics = [#tpu.dimension_semantics<parallel>], iteration_bounds = array<i64: 1>, scalar_prefetch = 0 : i64, scratch_operands = 0 : i64, tpu.core_type = #tpu.core_type<tc>, window_params = [{transform_indices = @transform_0, window_bounds = array<i64: 2>}, {transform_indices = @transform_1, window_bounds = array<i64: 4, 512>}, {transform_indices = @transform_2, window_bounds = array<i64: 4, 512>}]} {
    %c0 = arith.constant 0 : index
    %0 = memref.load %arg1[%c0] : memref<2xf32, #tpu.memory_space<smem>>
    %c1 = arith.constant 1 : index
    %1 = memref.load %arg1[%c1] : memref<2xf32, #tpu.memory_space<smem>>
    %c0_0 = arith.constant 0 : index
    %c0_1 = arith.constant 0 : index
    %2 = vector.load %arg2[%c0_0, %c0_1] : memref<4x512xf32, #tpu.memory_space<vmem>>, vector<4x512xf32>
    %3 = vector.broadcast %0 : f32 to vector<4x512xf32>
    %4 = arith.subf %2, %3 : vector<4x512xf32>
    %5 = vector.broadcast %1 : f32 to vector<4x512xf32>
    %6 = arith.mulf %4, %5 : vector<4x512xf32>
    %cst = arith.constant 0.000000e+00 : f32
    %7 = vector.broadcast %cst : f32 to vector<4x512xf32>
    %8 = arith.subf %7, %6 : vector<4x512xf32>
    %9 = math.exp %8 : vector<4x512xf32>
    %cst_2 = arith.constant 1.000000e+00 : f32
    %10 = vector.broadcast %cst_2 : f32 to vector<4x512xf32>
    %11 = arith.addf %10, %9 : vector<4x512xf32>
    %12 = tpu.reciprocal %11 : vector<4x512xf32> -> vector<4x512xf32>
    %c0_3 = arith.constant 0 : index
    %c0_4 = arith.constant 0 : index
    %13 = vector.load %arg3[%c0_3, %c0_4] : memref<4x512xf32, #tpu.memory_space<vmem>>, vector<4x512xf32>
    tpu.vector_store %arg3[%c0_3, %c0_4], %12 {strides = array<i32>} : memref<4x512xf32, #tpu.memory_space<vmem>>, vector<4x512xf32>,
    return
  }
  func.func @transform_0(%arg0: i32) -> i32 {
    %c0_i32 = arith.constant 0 : i32
    %c0_i32_0 = arith.constant 0 : i32
    return %c0_i32 : i32
  }
  func.func @transform_1(%arg0: i32) -> (i32, i32) {
    %c0_i32 = arith.constant 0 : i32
    %c0_i32_0 = arith.constant 0 : i32
    return %arg0, %c0_i32 : i32, i32
  }
  func.func @transform_2(%arg0: i32) -> (i32, i32) {
    %c0_i32 = arith.constant 0 : i32
    %c0_i32_0 = arith.constant 0 : i32
    return %arg0, %c0_i32 : i32, i32
  }
}

</mosaic_0001>

<bundles_post_ra>
// kernel: tpu_custom_call.1
= control target key start
LH: loop header
LB: loop body
LE: loop exit
PB: predicated region body
PF: predicated region fallthrough
CT: control target
= control target key end

     0   :  { %7 = vsyncpa [#allocation5], 0  ;;  %s199_s0 = inlined_call_operand.hbm [shape: f32[2], index: 0, kind: input, shape index: {}]   ;;  %s200_s1 = inlined_call_operand.hbm [shape: f32[4,512], index: 1, kind: input, shape index: {}]   ;;  %s201_s2 = inlined_call_operand.hbm [shape: f32[4,512], index: 2, kind: output, shape index: {}]  }
   0x1   :  { %8 = vsyncpa [#allocation3], 0 }
   0x2   :  { %9 = vsyncpa [#allocation4], 0  ;;  %s85_s11 = scalar_lea.hbm %s199_s0, 16 }
   0x3   :  { %p86_p0 = scmp.ne.s32.totalorder %s199_s0, %s85_s11  ;;  %p89_p1 = scmp.lt.u32.totalorder %s85_s11, %s199_s0 }
   0x5   :  { %p91_p2 = pnand %p89_p1, %p86_p0 }
   0x7   :  { %94 = shalt.err (!%p91_p2)
}
   0x8   :  { %s145_s16 = smov [#allocation2]   ;;  %s146_s19 = smov [#allocation6]  }
   0x9   :  { %17 = dma.hbm_to_smem %s199_s0, 16, %s145_s16, [#allocation5]  }
   0xa   :  { %s24_s20 = sshll.u32 %s146_s19, 4  ;;  %s95_s23 = scalar_lea.hbm %s200_s1, 256  ;;  %s25_s20 = int_to_ptr.vmem [resolvable:$true] %s24_s20 }
   0xb   :  { %p96_p3 = scmp.ne.s32.totalorder %s200_s1, %s95_s23  ;;  %p99_p4 = scmp.lt.u32.totalorder %s95_s23, %s200_s1 }
   0xd   :  { %p101_p5 = pnand %p99_p4, %p96_p3 }
   0xf   :  { %104 = shalt.err (!%p101_p5)
}
  0x10   :  { %s105_s28 = scalar_lea.vmem %s25_s20, 256  ;;  %p110_p7 = scmp.lt.s32.totalorder %s25_s20, %s25_s20 }
  0x11   :  { %p106_p6 = scmp.ne.s32.totalorder %s25_s20, %s105_s28  ;;  %p111_p8 = scmp.lt.s32.totalorder %s105_s28, %s105_s28 }
  0x13   :  { %p112_p9 = por %p111_p8, %p110_p7 }
  0x15   :  { %p113_p10 = pnand %p112_p9, %p106_p6 }
  0x17   :  { %116 = shalt.err (!%p113_p10)
}
  0x18   :  { %27 = dma.hbm_to_vmem [thread:$0]  %s200_s1, 256, %s25_s20, [#allocation3]  }
  0x19   :  { %139 = dma.done.wait [#allocation5], 16  }
  0x1a   :  { %140 = vsyncadd [#allocation5], 4294967280 }
  0x1b   :  { %141 = dma.done.wait [#allocation3], 256  }
  0x1c   :  { %142 = vsyncadd [#allocation3], 4294967040 }
  0x1d   :  { %34 = sfence }
  0x1e   :  { %s35_s30 = sld [smem:[#allocation2]]  ;;  %s73_s3 = sld [smem:[#allocation2 + $0x1]]  ;;  %v37_v0 = vld [vmem:[#allocation6] sm:$0xff]  ;;  %v38_v1 = vld [vmem:[#allocation6 + $0x8] sm:$0xff] }
  0x1f   :  { %s147_s1 = smov [#allocation7]  }
  0x20   :  { %s63_s4 = sshll.u32 %s147_s1, 4  ;;  %s64_s4 = int_to_ptr.vmem [resolvable:$true] %s63_s4 }
  0x21   :  { %s117_s5 = scalar_lea.vmem %s64_s4, 256  ;;  %p122_p12 = scmp.lt.s32.totalorder %s64_s4, %s64_s4 }
  0x22   :  { %p118_p11 = scmp.ne.s32.totalorder %s64_s4, %s117_s5  ;;  %p123_p13 = scmp.lt.s32.totalorder %s117_s5, %s117_s5 }
  0x24   :  { %v39_v2 = vstv %s35_s30  ;;  %v42_v3 = vstv %s73_s3  ;;  %p124_p0 = por %p123_p13, %p122_p12 }
  0x25   :  { %v40_v4 = vsub.f32 %v37_v0, %v39_v2  ;;  %v41_v5 = vsub.f32 %v38_v1, %v39_v2 }
  0x26   :  { %p125_p1 = pnand %p124_p0, %p118_p11 }
  0x27   :  { %v43_v6 = vmul.f32 %v42_v3, %v40_v4  ;;  %v44_v7 = vmul.f32 %v42_v3, %v41_v5 }
  0x29   :  { %v45_v8 = vsub.f32 0.0, %v43_v6  ;;  %v46_v9 = vsub.f32 0.0, %v44_v7 }
  0x2b   :  { %v47_v10 = vmul.f32 1.442695, %v45_v8  ;;  %v49_v11 = vmul.f32 1.442695, %v46_v9 }
  0x2d   :  { %77 = vpow2.f32 %v47_v10 }
  0x2e   :  { %79 = vpow2.f32 %v49_v11 }
  0x37   :  { %v78_v12 = vpop.eup %77 }
  0x38   :  { %v80_v13 = vpop.eup %79  ;;  %v51_v14 = vadd.f32 1.0, %v78_v12 }
  0x39   :  { %v52_v15 = vadd.f32 1.0, %v80_v13 }
  0x3a   :  { %81 = vrcp.f32 %v51_v14 }
  0x3b   :  { %83 = vrcp.f32 %v52_v15 }
  0x44   :  { %v82_v16 = vpop.eup %81 }
  0x45   :  { %v84_v17 = vpop.eup %83  ;;  %55 = vst [vmem:[#allocation7] sm:$0xff] %v82_v16 }
  0x46   :  { %56 = vst [vmem:[#allocation7 + $0x8] sm:$0xff] %v84_v17 }
  0x47   :  { %128 = shalt.err (!%p125_p1)
}
  0x48   :  { %s129_s8 = scalar_lea.hbm %s201_s2, 256 }
  0x49   :  { %p130_p2 = scmp.ne.s32.totalorder %s201_s2, %s129_s8  ;;  %p133_p3 = scmp.lt.u32.totalorder %s129_s8, %s201_s2 }
  0x4b   :  { %p135_p4 = pnand %p133_p3, %p130_p2 }
  0x4d   :  { %138 = shalt.err (!%p135_p4)
}
  0x4e   :  { %66 = dma.vmem_to_hbm [thread:$0]  %s64_s4, 256, %s201_s2, [#allocation4]  }
  0x4f   :  { %143 = dma.done.wait [#allocation4], 256  }
  0x50   :  { %144 = vsyncadd [#allocation4], 4294967040 }
  0x51   :  { %70 = vsyncpa [#allocation3], 1 }
  0x52   :  { %71 = vsyncpa [#allocation4], 1 }
  0x53   :  { %72 = vsyncpa [#allocation5], 1 }

</bundles_post_ra>
